<compile_context>
chip_gen: v5e
topology: v5e:2x2
jax: 0.10.0
libtpu: 0.0.40
codegen_flags: <defaults>
</compile_context>

<pallas_src>
import math

import jax
import jax.numpy as jnp
from jax import lax
from jax.experimental import pallas as pl
from jax.experimental.pallas import tpu as pltpu

LANES = 128      # pad C_out to a lane multiple -> unmasked, lane-dense stores
TM_MAX = 1024    # max GEMM rows (output spatial positions) per grid step


def _softplus(x):
    # torch.nn.Softplus(beta=1, threshold=20); log1p for small-x accuracy.
    return jnp.where(x > 20.0, x, jnp.log1p(jnp.exp(jnp.minimum(x, 20.0))))


def _vmem_limit_bytes():
    """Per-generation scoped-VMEM budget (raise on v5e/v6e, stay safe on v7x)."""
    try:
        cap = pltpu.get_tpu_info().vmem_capacity_bytes
    except Exception:
        cap = 64 * 1024 * 1024
    return int(min(max(cap - 16 * 1024 * 1024, 32 * 1024 * 1024), 100 * 1024 * 1024))


# ---------------------------------------------------------------------------
# Kernel: implicit GEMM over depth taps (MXU, bf16 in / f32 acc) + Softplus
#         + per-tile BatchNorm partial statistics (sum, centered M2)
# ---------------------------------------------------------------------------
def _make_conv_kernel(k, tm, cnt_last, mask_needed):
    def kernel(*refs):
        x_refs = refs[:k]          # k refs, each (TM, Kc) bf16 (depth tap kd)
        w_ref = refs[k]            # (k, Kc, Cp) bf16, VMEM-resident (constant index map)
        y_ref = refs[k + 1]        # (TM, Cp) bf16
        stat_ref = refs[k + 2]     # (2, Cp)  f32

        # acc = sum_kd  X_kd @ W_kd   (k shifted matmuls, f32 accumulation)
        acc = jnp.dot(x_refs[0][...], w_ref[0],
                      preferred_element_type=jnp.float32)
        for kd in range(1, k):
            acc = acc + jnp.dot(x_refs[kd][...], w_ref[kd],
                                preferred_element_type=jnp.float32)

        y = _softplus(acc)                       # (TM, Cp) f32
        y_ref[...] = y.astype(y_ref.dtype)       # lane-dense bf16 store

        inv_tm = 1.0 / float(tm)

        def _stats_unmasked():
            s = jnp.sum(y, axis=0, keepdims=True)
            mu = s * inv_tm
            d = y - mu
            stat_ref[0:1, :] = s
            stat_ref[1:2, :] = jnp.sum(d * d, axis=0, keepdims=True)

        if not mask_needed:
            # No padded rows anywhere (static) -> always the cheap path.
            _stats_unmasked()
        else:
            # Only the last row-block of each (n, d) plane has padded rows.
            is_last = pl.program_id(2) == pl.num_programs(2) - 1

            @pl.when(jnp.logical_not(is_last))
            def _():
                _stats_unmasked()

            @pl.when(is_last)
            def _():
                row = lax.broadcasted_iota(jnp.int32, (tm, 1), 0)
                valid = row < cnt_last
                yv = jnp.where(valid, y, 0.0)
                s = jnp.sum(yv, axis=0, keepdims=True)
                mu = s * (1.0 / float(cnt_last))
                d = jnp.where(valid, y - mu, 0.0)
                stat_ref[0:1, :] = s
                stat_ref[1:2, :] = jnp.sum(d * d, axis=0, keepdims=True)

    return kernel


def conv_softplus_stats_pallas(x_col, w_all, *, stride, dilation, Do, tm, mb, cnt_last):
    """x_col: (N, Dp, Mr, Kc) bf16, w_all: (k, Kc, Cp) bf16 ->
       y: (N, Do, Mr, Cp) bf16, partials: (N, Do, mb, 2, Cp) f32."""
    N, _, Mr, Kc = x_col.shape
    k, _, Cp = w_all.shape
    mask_needed = cnt_last != tm
    kernel = _make_conv_kernel(k, tm, cnt_last, mask_needed)

    x_specs = [
        pl.BlockSpec((None, None, tm, Kc),
                     lambda n, d, m, kd=kd: (n, d * stride + kd * dilation, m, 0))
        for kd in range(k)
    ]
    w_spec = pl.BlockSpec((k, Kc, Cp), lambda n, d, m: (0, 0, 0))
    y_spec = pl.BlockSpec((None, None, tm, Cp), lambda n, d, m: (n, d, m, 0))
    stat_spec = pl.BlockSpec((None, None, None, 2, Cp),
                             lambda n, d, m: (n, d, m, 0, 0))

    return pl.pallas_call(
        kernel,
        out_shape=(jax.ShapeDtypeStruct((N, Do, Mr, Cp), jnp.bfloat16),
                   jax.ShapeDtypeStruct((N, Do, mb, 2, Cp), jnp.float32)),
        grid_spec=pltpu.PrefetchScalarGridSpec(
            num_scalar_prefetch=0,
            grid=(N, Do, mb),
            in_specs=x_specs + [w_spec],
            out_specs=(y_spec, stat_spec)),
        compiler_params=pltpu.CompilerParams(
            dimension_semantics=("parallel", "parallel", "parallel"),
            vmem_limit_bytes=_vmem_limit_bytes()),
    )(*([x_col] * k), w_all)


# ---------------------------------------------------------------------------
# Host-side data staging (single light pass; only a k^2 inflation, in bf16)
# ---------------------------------------------------------------------------
def build_xcol_and_weight(x, weight, k, stride, padding, dilation, tm_max=TM_MAX):
    N, C, D, H, W = x.shape
    C_out = weight.shape[0]

    eff = dilation * (k - 1) + 1
    Do = (D + 2 * padding - eff) // stride + 1
    Ho = (H + 2 * padding - eff) // stride + 1
    Wo = (W + 2 * padding - eff) // stride + 1
    Dp = D + 2 * padding

    # channels-last, spatially padded, bf16
    x_cl = jnp.transpose(x, (0, 2, 3, 4, 1))
    x_p = jnp.pad(x_cl, ((0, 0), (padding, padding), (padding, padding),
                         (padding, padding), (0, 0))).astype(jnp.bfloat16)

    # Un-overlap H and W only: concat of k^2 strided slices along the channel
    # axis.  The depth taps stay overlapped and are reduced inside the kernel.
    slabs = []
    for kh in range(k):
        for kw in range(k):
            slabs.append(
                x_p[:, :,
                    kh * dilation: kh * dilation + stride * (Ho - 1) + 1: stride,
                    kw * dilation: kw * dilation + stride * (Wo - 1) + 1: stride, :])
    Kc = k * k * C
    x_col = jnp.concatenate(slabs, axis=-1)           # (N, Dp, Ho, Wo, k*k*C)
    x_col = x_col.reshape(N, Dp, Ho * Wo, Kc)         # free dims-merge reshape

    HoWo = Ho * Wo
    if HoWo <= tm_max:
        tm, mb = HoWo, 1                              # no row padding, no masking
    else:
        tm = tm_max
        mb = (HoWo + tm - 1) // tm
        mr = mb * tm
        if mr != HoWo:
            # TODO(synk): ragged last tile -> one pad pass over the k^2 tensor.
            x_col = jnp.pad(x_col, ((0, 0), (0, 0), (0, mr - HoWo), (0, 0)))
    cnt_last = HoWo - (mb - 1) * tm

    # weight (C_out, C_in, kd, kh, kw) -> (kd, (kh, kw, c), co), co padded, bf16
    Cp = ((C_out + LANES - 1) // LANES) * LANES
    w_all = jnp.transpose(weight, (2, 3, 4, 1, 0)).reshape(k, Kc, C_out)
    w_all = jnp.pad(w_all, ((0, 0), (0, 0), (0, Cp - C_out))).astype(jnp.bfloat16)

    dims = (N, Do, Ho, Wo, C_out, Cp, HoWo, tm, mb, cnt_last)
    return x_col, w_all, dims


# ---------------------------------------------------------------------------
# BConvBlock forward (training mode, bias=False)
# ---------------------------------------------------------------------------
def bconvblock_forward(x, mu_weight, sigma_weight, eps_weight, gamma, beta,
                       kernel_size, stride, padding, dilation):
    """Returns (out, kl) like BConvBlock.forward."""
    # ---- Bayesian weight sample (BConv._sample_w) ----
    sig_weight = jnp.exp(sigma_weight)
    weight = mu_weight + sig_weight * eps_weight
    # TODO(synk): `prior` is an injected dependency with unspecified kl_div();
    # assume an isotropic standard-normal prior and the MC estimate sum(log q - log p).
    log_q = (-0.5 * math.log(2 * math.pi) - jnp.log(sig_weight)
             - 0.5 * ((weight - mu_weight) / sig_weight) ** 2)
    log_p = -0.5 * math.log(2 * math.pi) - 0.5 * weight ** 2
    kl = jnp.sum(log_q - log_p)

    # ---- conv3d + softplus + BN partial stats: single fused Pallas pass ----
    k = kernel_size
    x_col, w_all, dims = build_xcol_and_weight(x, weight, k, stride, padding, dilation)
    N, Do, Ho, Wo, C_out, Cp, HoWo, tm, mb, cnt_last = dims

    y, partials = conv_softplus_stats_pallas(
        x_col, w_all, stride=stride, dilation=dilation, Do=Do,
        tm=tm, mb=mb, cnt_last=cnt_last)

    # ---- BatchNorm3d training stats: stable Chan combine of tile partials ----
    Mtot = N * Do * HoWo
    counts = jnp.minimum(tm, HoWo - jnp.arange(mb) * tm).astype(jnp.float32)  # (mb,)
    sums = partials[..., 0, :]                                  # (N, Do, mb, Cp)
    m2s = partials[..., 1, :]
    mean = jnp.sum(sums, axis=(0, 1, 2)) / Mtot                 # (Cp,)
    tile_means = sums / counts[None, None, :, None]
    m2 = (jnp.sum(m2s, axis=(0, 1, 2))
          + jnp.sum(counts[None, None, :, None] * (tile_means - mean) ** 2,
                    axis=(0, 1, 2)))
    var = m2 / Mtot

    mean_c = mean[:C_out]
    invstd = lax.rsqrt(var[:C_out] + 1e-5)
    scale = gamma.reshape(-1) * invstd                          # (C_out,)
    shift = beta.reshape(-1) - mean_c * scale

    # ---- BN apply: plain-JAX FMA, fused by XLA with slice/reshape/transpose ----
    y_val = y[:, :, :HoWo, :C_out].astype(jnp.float32)          # (N, Do, HoWo, C_out)
    out = y_val * scale + shift
    out = out.reshape(N, Do, Ho, Wo, C_out).transpose(0, 4, 1, 2, 3)  # NCDHW
    return out, kl


if __name__ == "__main__":
    # Small shapes consistent with the 3-D module (dim=3 default).
    N, C_in, C_out = 2, 4, 8
    D = H = W = 8
    kernel_size, stride, padding, dilation = 3, 1, 1, 1
    var_init = 0.05

    key = jax.random.PRNGKey(0)
    k_mu, k_eps, k_x = jax.random.split(key, 3)

    # BConv.reset_parameters()
    fan = C_in * kernel_size ** 3
    stdv = 1.0 / math.sqrt(fan)
    w_shape = (C_out, C_in, kernel_size, kernel_size, kernel_size)
    mu_weight = jax.random.uniform(k_mu, w_shape, minval=-stdv, maxval=stdv,
                                   dtype=jnp.float32)
    sigma_weight = jnp.full(w_shape, math.log(var_init), dtype=jnp.float32)
    eps_weight = jax.random.normal(k_eps, w_shape, dtype=jnp.float32)

    # Fresh BatchNorm3d affine params: gamma=1, beta=0
    gamma = jnp.ones((1, C_out), jnp.float32)
    beta = jnp.zeros((1, C_out), jnp.float32)

    x = jax.random.normal(k_x, (N, C_in, D, H, W), dtype=jnp.float32)  # NCDHW

    fwd = jax.jit(lambda x: bconvblock_forward(
        x, mu_weight, sigma_weight, eps_weight, gamma, beta,
        kernel_size, stride, padding, dilation))
    out, kl = fwd(x)
    jax.block_until_ready((out, kl))

    weight = mu_weight + jnp.exp(sigma_weight) * eps_weight

    # (a) Matched-precision reference (bf16 conv inputs, f32 accumulation,
    #     bf16-rounded activation before normalization) -> tight tolerance.
    conv_m = lax.conv_general_dilated(
        x.astype(jnp.bfloat16), weight.astype(jnp.bfloat16),
        window_strides=(stride,) * 3, padding=[(padding, padding)] * 3,
        rhs_dilation=(dilation,) * 3,
        dimension_numbers=("NCDHW", "OIDHW", "NCDHW"),
        preferred_element_type=jnp.float32)
    act_m = _softplus(conv_m)
    mean_m = act_m.mean(axis=(0, 2, 3, 4), keepdims=True)
    var_m = act_m.var(axis=(0, 2, 3, 4), keepdims=True)
    act_m_bf = act_m.astype(jnp.bfloat16).astype(jnp.float32)
    ref_m = (act_m_bf - mean_m) * lax.rsqrt(var_m + 1e-5)

    # (b) Full f32 reference -> loose (bf16-appropriate) tolerance.
    conv_f = lax.conv_general_dilated(
        x, weight, window_strides=(stride,) * 3, padding=[(padding, padding)] * 3,
        rhs_dilation=(dilation,) * 3,
        dimension_numbers=("NCDHW", "OIDHW", "NCDHW"))
    act_f = _softplus(conv_f)
    mean_f = act_f.mean(axis=(0, 2, 3, 4), keepdims=True)
    var_f = act_f.var(axis=(0, 2, 3, 4), keepdims=True)
    ref_f = (act_f - mean_f) * lax.rsqrt(var_f + 1e-5)

    assert out.shape == (N, C_out, D, H, W)
    assert jnp.max(jnp.abs(out - ref_m)) < 5e-3, "mismatch vs matched-precision reference"
    assert jnp.max(jnp.abs(out - ref_f)) < 5e-2, "mismatch vs f32 reference"
    # Batch-norm semantics: per-channel mean ~ 0, std ~ 1.
    ch_mean = out.mean(axis=(0, 2, 3, 4))
    ch_std = out.std(axis=(0, 2, 3, 4))
    assert jnp.max(jnp.abs(ch_mean)) < 5e-3
    assert jnp.max(jnp.abs(ch_std - 1.0)) < 2e-2
    assert bool(jnp.isfinite(kl))
    print("KERNEL_OK")
</pallas_src>

<mosaic_0001>
module attributes {stable_mosaic.version = 11 : i64} {
  func.func @kernel(%arg0: i32, %arg1: i32, %arg2: i32, %arg3: memref<1x1x64x36xbf16, #tpu.memory_space<vmem>>, %arg4: memref<1x1x64x36xbf16, #tpu.memory_space<vmem>>, %arg5: memref<1x1x64x36xbf16, #tpu.memory_space<vmem>>, %arg6: memref<3x36x128xbf16, #tpu.memory_space<vmem>>, %arg7: memref<1x1x64x128xbf16, #tpu.memory_space<vmem>>, %arg8: memref<1x1x1x2x128xf32, #tpu.memory_space<vmem>>) attributes {dimension_semantics = [#tpu.dimension_semantics<parallel>, #tpu.dimension_semantics<parallel>, #tpu.dimension_semantics<parallel>], iteration_bounds = array<i64: 2, 8, 1>, scalar_prefetch = 0 : i64, scratch_operands = 0 : i64, tpu.core_type = #tpu.core_type<tc>, window_params = [{transform_indices = @transform_0, window_bounds = array<i64: 1, 1, 64, 36>}, {transform_indices = @transform_1, window_bounds = array<i64: 1, 1, 64, 36>}, {transform_indices = @transform_2, window_bounds = array<i64: 1, 1, 64, 36>}, {pipeline_mode = #tpu.pipeline_mode<synchronous>, transform_indices = @transform_3, window_bounds = array<i64: 3, 36, 128>}, {transform_indices = @transform_4, window_bounds = array<i64: 1, 1, 64, 128>}, {transform_indices = @transform_5, window_bounds = array<i64: 1, 1, 1, 2, 128>}]} {
    %c0 = arith.constant 0 : index
    %c0_0 = arith.constant 0 : index
    %c0_1 = arith.constant 0 : index
    %c0_2 = arith.constant 0 : index
    %0 = vector.load %arg3[%c0, %c0_0, %c0_1, %c0_2] : memref<1x1x64x36xbf16, #tpu.memory_space<vmem>>, vector<1x1x64x36xbf16>
    %1 = vector.shape_cast %0 : vector<1x1x64x36xbf16> to vector<64x36xbf16>
    %c0_3 = arith.constant 0 : index
    %c0_4 = arith.constant 0 : index
    %c0_5 = arith.constant 0 : index
    %2 = vector.load %arg6[%c0_3, %c0_4, %c0_5] : memref<3x36x128xbf16, #tpu.memory_space<vmem>>, vector<1x36x128xbf16>
    %3 = vector.shape_cast %2 : vector<1x36x128xbf16> to vector<36x128xbf16>
    %cst = arith.constant dense<0.000000e+00> : vector<64x128xf32>
    %4 = tpu.matmul %1, %3, %cst {dimension_numbers = #tpu.dot_dimension_numbers<[1], [0], [0], [1], [0, 0, 1, 1], [], []>} : vector<64x36xbf16>, vector<36x128xbf16>, vector<64x128xf32> -> vector<64x128xf32>
    %c0_6 = arith.constant 0 : index
    %c0_7 = arith.constant 0 : index
    %c0_8 = arith.constant 0 : index
    %c0_9 = arith.constant 0 : index
    %5 = vector.load %arg4[%c0_6, %c0_7, %c0_8, %c0_9] : memref<1x1x64x36xbf16, #tpu.memory_space<vmem>>, vector<1x1x64x36xbf16>
    %6 = vector.shape_cast %5 : vector<1x1x64x36xbf16> to vector<64x36xbf16>
    %c1 = arith.constant 1 : index
    %c0_10 = arith.constant 0 : index
    %c0_11 = arith.constant 0 : index
    %7 = vector.load %arg6[%c1, %c0_10, %c0_11] : memref<3x36x128xbf16, #tpu.memory_space<vmem>>, vector<1x36x128xbf16>
    %8 = vector.shape_cast %7 : vector<1x36x128xbf16> to vector<36x128xbf16>
    %cst_12 = arith.constant dense<0.000000e+00> : vector<64x128xf32>
    %9 = tpu.matmul %6, %8, %cst_12 {dimension_numbers = #tpu.dot_dimension_numbers<[1], [0], [0], [1], [0, 0, 1, 1], [], []>} : vector<64x36xbf16>, vector<36x128xbf16>, vector<64x128xf32> -> vector<64x128xf32>
    %10 = arith.addf %4, %9 : vector<64x128xf32>
    %c0_13 = arith.constant 0 : index
    %c0_14 = arith.constant 0 : index
    %c0_15 = arith.constant 0 : index
    %c0_16 = arith.constant 0 : index
    %11 = vector.load %arg5[%c0_13, %c0_14, %c0_15, %c0_16] : memref<1x1x64x36xbf16, #tpu.memory_space<vmem>>, vector<1x1x64x36xbf16>
    %12 = vector.shape_cast %11 : vector<1x1x64x36xbf16> to vector<64x36xbf16>
    %c2 = arith.constant 2 : index
    %c0_17 = arith.constant 0 : index
    %c0_18 = arith.constant 0 : index
    %13 = vector.load %arg6[%c2, %c0_17, %c0_18] : memref<3x36x128xbf16, #tpu.memory_space<vmem>>, vector<1x36x128xbf16>
    %14 = vector.shape_cast %13 : vector<1x36x128xbf16> to vector<36x128xbf16>
    %cst_19 = arith.constant dense<0.000000e+00> : vector<64x128xf32>
    %15 = tpu.matmul %12, %14, %cst_19 {dimension_numbers = #tpu.dot_dimension_numbers<[1], [0], [0], [1], [0, 0, 1, 1], [], []>} : vector<64x36xbf16>, vector<36x128xbf16>, vector<64x128xf32> -> vector<64x128xf32>
    %16 = arith.addf %10, %15 : vector<64x128xf32>
    %cst_20 = arith.constant 2.000000e+01 : f32
    %17 = vector.broadcast %cst_20 : f32 to vector<64x128xf32>
    %18 = arith.cmpf ogt, %16, %17 : vector<64x128xf32>
    %cst_21 = arith.constant 2.000000e+01 : f32
    %19 = vector.broadcast %cst_21 : f32 to vector<64x128xf32>
    %20 = arith.minimumf %16, %19 : vector<64x128xf32>
    %21 = math.exp %20 : vector<64x128xf32>
    %22 = math.log1p %21 : vector<64x128xf32>
    %23 = arith.select %18, %16, %22 : vector<64x128xi1>, vector<64x128xf32>
    %24 = arith.truncf %23 : vector<64x128xf32> to vector<64x128xbf16>
    %c0_22 = arith.constant 0 : index
    %c0_23 = arith.constant 0 : index
    %c0_24 = arith.constant 0 : index
    %c0_25 = arith.constant 0 : index
    %25 = vector.load %arg7[%c0_22, %c0_23, %c0_24, %c0_25] : memref<1x1x64x128xbf16, #tpu.memory_space<vmem>>, vector<1x1x64x128xbf16>
    %26 = vector.shape_cast %25 : vector<1x1x64x128xbf16> to vector<64x128xbf16>
    %27 = vector.shape_cast %24 : vector<64x128xbf16> to vector<1x1x64x128xbf16>
    tpu.vector_store %arg7[%c0_22, %c0_23, %c0_24, %c0_25], %27 {strides = array<i32>} : memref<1x1x64x128xbf16, #tpu.memory_space<vmem>>, vector<1x1x64x128xbf16>,
    %cst_26 = arith.constant dense<0.000000e+00> : vector<128xf32>
    %28 = vector.multi_reduction <add>, %23, %cst_26 [0] : vector<64x128xf32> to vector<128xf32>
    %29 = vector.shape_cast %28 : vector<128xf32> to vector<1x128xf32>
    %cst_27 = arith.constant 1.562500e-02 : f32
    %30 = vector.broadcast %cst_27 : f32 to vector<1x128xf32>
    %31 = arith.mulf %29, %30 : vector<1x128xf32>
    %32 = vector.broadcast %31 : vector<1x128xf32> to vector<64x128xf32>
    %33 = arith.subf %23, %32 : vector<64x128xf32>
    %c0_28 = arith.constant 0 : index
    %c0_29 = arith.constant 0 : index
    %c0_30 = arith.constant 0 : index
    %c0_31 = arith.constant 0 : index
    %c0_32 = arith.constant 0 : index
    %34 = vector.load %arg8[%c0_28, %c0_29, %c0_30, %c0_31, %c0_32] : memref<1x1x1x2x128xf32, #tpu.memory_space<vmem>>, vector<1x1x1x1x128xf32>
    %35 = vector.shape_cast %34 : vector<1x1x1x1x128xf32> to vector<1x128xf32>
    %36 = vector.shape_cast %29 : vector<1x128xf32> to vector<1x1x1x1x128xf32>
    tpu.vector_store %arg8[%c0_28, %c0_29, %c0_30, %c0_31, %c0_32], %36 {strides = array<i32>} : memref<1x1x1x2x128xf32, #tpu.memory_space<vmem>>, vector<1x1x1x1x128xf32>,
    %37 = arith.mulf %33, %33 : vector<64x128xf32>
    %cst_33 = arith.constant dense<0.000000e+00> : vector<128xf32>
    %38 = vector.multi_reduction <add>, %37, %cst_33 [0] : vector<64x128xf32> to vector<128xf32>
    %39 = vector.shape_cast %38 : vector<128xf32> to vector<1x128xf32>
    %c0_34 = arith.constant 0 : index
    %c0_35 = arith.constant 0 : index
    %c0_36 = arith.constant 0 : index
    %c1_37 = arith.constant 1 : index
    %c0_38 = arith.constant 0 : index
    %40 = vector.load %arg8[%c0_34, %c0_35, %c0_36, %c1_37, %c0_38] : memref<1x1x1x2x128xf32, #tpu.memory_space<vmem>>, vector<1x1x1x1x128xf32>
    %41 = vector.shape_cast %40 : vector<1x1x1x1x128xf32> to vector<1x128xf32>
    %42 = vector.shape_cast %39 : vector<1x128xf32> to vector<1x1x1x1x128xf32>
    tpu.vector_store %arg8[%c0_34, %c0_35, %c0_36, %c1_37, %c0_38], %42 {strides = array<i32>} : memref<1x1x1x2x128xf32, #tpu.memory_space<vmem>>, vector<1x1x1x1x128xf32>,
    return
  }
  func.func @transform_0(%arg0: i32, %arg1: i32, %arg2: i32) -> (i32, i32, i32, i32) {
    %c1_i32 = arith.constant 1 : i32
    %0 = arith.muli %arg1, %c1_i32 : i32
    %c0_i32 = arith.constant 0 : i32
    %1 = arith.addi %0, %c0_i32 : i32
    %c0_i32_0 = arith.constant 0 : i32
    %c0_i32_1 = arith.constant 0 : i32
    return %arg0, %1, %arg2, %c0_i32_0 : i32, i32, i32, i32
  }
  func.func @transform_1(%arg0: i32, %arg1: i32, %arg2: i32) -> (i32, i32, i32, i32) {
    %c1_i32 = arith.constant 1 : i32
    %0 = arith.muli %arg1, %c1_i32 : i32
    %c1_i32_0 = arith.constant 1 : i32
    %1 = arith.addi %0, %c1_i32_0 : i32
    %c0_i32 = arith.constant 0 : i32
    %c0_i32_1 = arith.constant 0 : i32
    return %arg0, %1, %arg2, %c0_i32 : i32, i32, i32, i32
  }
  func.func @transform_2(%arg0: i32, %arg1: i32, %arg2: i32) -> (i32, i32, i32, i32) {
    %c1_i32 = arith.constant 1 : i32
    %0 = arith.muli %arg1, %c1_i32 : i32
    %c2_i32 = arith.constant 2 : i32
    %1 = arith.addi %0, %c2_i32 : i32
    %c0_i32 = arith.constant 0 : i32
    %c0_i32_0 = arith.constant 0 : i32
    return %arg0, %1, %arg2, %c0_i32 : i32, i32, i32, i32
  }
  func.func @transform_3(%arg0: i32, %arg1: i32, %arg2: i32) -> (i32, i32, i32) {
    %c0_i32 = arith.constant 0 : i32
    %c0_i32_0 = arith.constant 0 : i32
    %c0_i32_1 = arith.constant 0 : i32
    %c0_i32_2 = arith.constant 0 : i32
    return %c0_i32, %c0_i32_0, %c0_i32_1 : i32, i32, i32
  }
  func.func @transform_4(%arg0: i32, %arg1: i32, %arg2: i32) -> (i32, i32, i32, i32) {
    %c0_i32 = arith.constant 0 : i32
    %c0_i32_0 = arith.constant 0 : i32
    return %arg0, %arg1, %arg2, %c0_i32 : i32, i32, i32, i32
  }
  func.func @transform_5(%arg0: i32, %arg1: i32, %arg2: i32) -> (i32, i32, i32, i32, i32) {
    %c0_i32 = arith.constant 0 : i32
    %c0_i32_0 = arith.constant 0 : i32
    %c0_i32_1 = arith.constant 0 : i32
    return %arg0, %arg1, %arg2, %c0_i32, %c0_i32_0 : i32, i32, i32, i32, i32
  }
}

</mosaic_0001>

<bundles_post_ra>
// kernel: _lambda_.1
= control target key start
LH: loop header
LB: loop body
LE: loop exit
PB: predicated region body
PF: predicated region fallthrough
CT: control target
= control target key end

     0   :  { %s1425_s18 = smov 0   ;;  %s1427_s19 = smov 0   ;;  %s1628_s0 = inlined_call_operand.vmem [shape: bf16[2,10,64,36], index: 0, kind: input, shape index: {}, may-alias: {0,1,2}]   ;;  %s1629_s1 = inlined_call_operand.vmem [shape: bf16[2,10,64,36], index: 1, kind: input, shape index: {}, may-alias: {0,1,2}]   ;;  %s1630_s2 = inlined_call_operand.vmem [shape: bf16[2,10,64,36], index: 2, kind: input, shape index: {}, may-alias: {0,1,2}]   ;;  %s1631_s3 = inlined_call_operand.vmem [shape: bf16[3,36,128], index: 3, kind: input, shape index: {}]   ;;  %s1632_s4 = inlined_call_operand.vmem [shape: bf16[2,8,64,128], index: 4, kind: output, shape index: {0}]   ;;  %s1633_s5 = inlined_call_operand.vmem [shape: f32[2,8,1,2,128], index: 5, kind: output, shape index: {1}]  }
   0x1   :  { %s1429_s20 = smov 0   ;;  %s1431_s21 = smov 0  }
   0x2   :  { %s1433_s22 = smov 0  }
   0x3 LB: > { %s31_s23 = sadd.s32 1, %s1385_s20  ;;  %s35_s24 = sadd.s32 1, %s1389_s21  ;;  %s1393_s22 = sphi %s1433_s22, %s16_s22   ;;  %s1389_s21 = sphi %s1431_s21, %s1639_s21   ;;  %s1385_s20 = sphi %s1429_s20, %s1638_s20   ;;  %s1381_s19 = sphi %s1427_s19, %s1637_s19   ;;  %s1377_s18 = sphi %s1425_s18, %s1636_s18  }
   0x4   : > { %p33_p0 = scmp.ge.s32.totalorder %s31_s23, 8  ;;  %p1124_p1 = scmp.ge.s32.totalorder %s1393_s22, 1 }
   0x5   : > { %p284_p2 = scmp.lt.s32.totalorder %s1393_s22, 17 }
   0x6   : > { %s1641_s23 = smov (%p33_p0, %s31_s23), 0  ;;  %s1643_s24 = smov (!%p33_p0, %s35_s24), %s1389_s21 }
   0x7   : > { %p285_p3 = pnand %p1124_p1, %p284_p2  ;;  %p37_p4 = scmp.ge.s32.totalorder %s1643_s24, 2 }
   0x8   : > { %p368_p5 = scmp.lt.s32.totalorder (!%p285_p3), %s1381_s19, 1  ;;  %s381_s6 = sadd.s32 (!%p285_p3), 1, %s1377_s18 }
   0x9   : > { %s1645_s24 = smov (%p37_p4, %s1643_s24), 0  ;;  %288 = sbr.rel (%p285_p3) target bundleno = 284 (0x11c), region = 36 }
   0xa   : > { %p385_p6 = scmp.lt.s32.totalorder (!%p285_p3), %s381_s6, 9  ;;  %s397_s7 = sadd.s32 (!%p285_p3), 2, %s1377_s18 }
   0xb   : > { %p401_p7 = scmp.lt.s32.totalorder (!%p285_p3), %s397_s7, 9  ;;  %p370_p8 = scmp.lt.s32.totalorder (!%p285_p3), %s1377_s18, 9 }
   0xc   : > { %p416_p9 = scmp.lt.s32.totalorder (!%p285_p3), %s1377_s18, 7 }
   0xe   : > { %v1140_v0 = vld [vmem:[%s1631_s3 + $0x24] sm:$0x3]  ;;  %v1201_v1 = vld [vmem:[%s1631_s3 + $0x38] sm:$0x3]  ;;  %v451_v4 = vld [vmem:[%s1631_s3 + $0x10] sm:$0x3] }
   0xf   : > { %v495_v2 = vunpack.c.l.b16 %v1140_v0  ;;  %v669_v3 = vunpack.c.l.b16 %v1201_v1  ;;  %vm514_vm0 = vcmask 1041408   ;;  %v576_v5 = vunpack.c.l.b16 %v451_v4  ;;  %s1647_s19 = smov (!%p368_p5, %s1381_s19), 1  ;;  %s1649_s6 = smov (!%p385_p6, %s381_s6), 9  ;;  %v1243_v12 = vld [vmem:[%s1631_s3 + $0x1c] sm:$0xff]  ;;  %v1249_v13 = vld [vmem:[%s1631_s3 + $0x30] sm:$0xff]  ;;  %v1237_v14 = vld [vmem:[%s1631_s3 + $0x8] sm:$0xff] }
  0x10   : > { %s1471_s8 = smul.u32 80, %s1647_s19  ;;  %s1127_s11 = sshll.u32 %s1649_s6, 3  ;;  %v1242_v15 = vld [vmem:[%s1631_s3 + $0x14] sm:$0xff]  ;;  %v1248_v16 = vld [vmem:[%s1631_s3 + $0x28] sm:$0xff]  ;;  %v1236_v17 = vld [vmem:[%s1631_s3] sm:$0xff]  ;;  %vm501_vm1 = vcmask 293888  }
  0x11   : > { %v498_v6 = vpack.c.b16 %v495_v2, %v495_v2  ;;  %v672_v7 = vpack.c.b16 %v669_v3, %v669_v3  ;;  %v579_v8 = vpack.c.b16 %v576_v5, %v576_v5  ;;  %s1651_s7 = smov (!%p401_p7, %s397_s7), 9 }
  0x12   : > { %s392_s16 = sadd.s32 %s1471_s8, %s1127_s11  ;;  %s1129_s12 = sshll.u32 %s1651_s7, 3 }
  0x13   : > { %v516_v9 = vsel %vm514_vm0, %v498_v6, 0  ;;  %v688_v10 = vsel %vm514_vm0, %v672_v7, 0  ;;  %v595_v11 = vsel %vm514_vm0, %v579_v8, 0  ;;  %s1128_s17 = sshll.u32 %s392_s16, 2  ;;  %s408_s13 = sadd.s32 %s1471_s8, %s1129_s12 }
  0x14   : > { %523 = vmatpush.bf16.msra.mxu0 %v516_v9  ;;  %1273 = vmatpush.bf16.msra.mxu3 %v516_v9  ;;  %s1487_s27 = scalar_lea.vmem %s1629_s1, %s1128_s17  ;;  %s1130_s15 = sshll.u32 %s408_s13, 2 }
  0x15   : > { %1279 = vmatpush.bf16.msra.mxu2 %v688_v10  ;;  %1276 = vmatpush.bf16.msra.mxu1 %v595_v11  ;;  %s371_s11 = scalar_select %p370_p8, %s1377_s18, 9  ;;  %v1238_v18 = vld [vmem:[%s1487_s27] sm:$0xff]  ;;  %v1239_v19 = vld [vmem:[%s1487_s27 + $0x8] sm:$0xff]  ;;  %v1240_v22 = vld [vmem:[%s1487_s27 + $0x10] sm:$0xff] }
  0x16   : > { %s410_s26 = scalar_lea.vmem %s1630_s2, %s1130_s15  ;;  %v1241_v26 = vld [vmem:[%s1487_s27 + $0x18] sm:$0xff]  ;;  %s1653_s18 = smov (!%p416_p9, %s1377_s18), 7 }
  0x17   : > { %s1125_s14 = sshll.u32 %s371_s11, 3  ;;  %v1245_v20 = vld [vmem:[%s410_s26 + $0x8] sm:$0xff]  ;;  %v1246_v24 = vld [vmem:[%s410_s26 + $0x10] sm:$0xff]  ;;  %v1244_v27 = vld [vmem:[%s410_s26] sm:$0xff]  ;;  %s1132_s27 = sshll.u32 %s1647_s19, 6 }
  0x18   : > { %524 = vmatpush.bf16.msra.mxu0 %v1243_v12  ;;  %1274 = vmatpush.bf16.msra.mxu3 %v1243_v12  ;;  %s377_s16 = sadd.s32 %s1471_s8, %s1125_s14  ;;  %v1247_v28 = vld [vmem:[%s410_s26 + $0x18] sm:$0xff]  ;;  %s1131_s8 = sshll.u32 %s1653_s18, 3 }
  0x19   : > { %1280 = vmatpush.bf16.msra.mxu2 %v1249_v13  ;;  %1277 = vmatpush.bf16.msra.mxu1 %v1237_v14  ;;  %s1126_s28 = sshll.u32 %s377_s16, 2  ;;  %s423_s6 = sadd.s32 %s1132_s27, %s1131_s8 }
  0x1a   : > { %s379_s30 = scalar_lea.vmem %s1628_s0, %s1126_s28  ;;  %s1133_s9 = sshll.u32 %s423_s6, 2 }
  0x1b   : > { %v1233_v21 = vld [vmem:[%s379_s30 + $0x8] sm:$0xff]  ;;  %v1232_v23 = vld [vmem:[%s379_s30] sm:$0xff]  ;;  %v1234_v25 = vld [vmem:[%s379_s30 + $0x10] sm:$0xff]  ;;  %s1562_s12 = scalar_lea.vmem %s1632_s4, %s1133_s9  ;;  %s1134_s13 = sshll.u32 %s1647_s19, 3 }
  0x1c   : > { %525 = vmatpush.bf16.msra.mxu0 %v1242_v15  ;;  %1275 = vmatpush.bf16.msra.mxu3 %v1242_v15  ;;  %v1235_v29 = vld [vmem:[%s379_s30 + $0x18] sm:$0xff]  ;;  %s435_s14 = sadd.s32 %s1134_s13, %s1653_s18 }
  0x1d   : > { %1281 = vmatpush.bf16.msra.mxu2 %v1248_v16  ;;  %1278 = vmatpush.bf16.msra.mxu1 %v1236_v17  ;;  %s1135_s15 = sshll.u32 %s435_s14, 1 }
  0x1e   : > { %s1605_s25 = scalar_lea.vmem %s1633_s5, %s1135_s15 }
  0x1f   : > { %1165 = vmatmul.msk.bf16.vlgmr.msra.gmra.mxu0 %vm501_vm1, %v1238_v18  ;;  %1166 = vmatmul.msk.bf16.vlgmr.msra.gmra.mxu3 %vm501_vm1, %v1239_v19 }
  0x20   : > { %602 = vmatpush.bf16.msrb.mxu0 %v595_v11  ;;  %1227 = vmatmul.msk.bf16.vlgmr.msra.gmra.mxu2 %vm501_vm1, %v1245_v20 }
  0x21   : > { %1194 = vmatmul.msk.bf16.vlgmr.msra.gmra.mxu1 %vm501_vm1, %v1233_v21 }
  0x24   : > { %603 = vmatpush.bf16.msrb.mxu0 %v1237_v14 }
  0x28   : > { %604 = vmatpush.bf16.msrb.mxu0 %v1236_v17 }
  0x2c   : > { %695 = vmatpush.bf16.msra.mxu0 %v688_v10 }
  0x2f   : > { %1167 = vmatmul.msk.bf16.gmra.mxu3 %vm501_vm1, %v1240_v22  ;;  %1193 = vmatmul.msk.bf16.vlgmr.msrb.gmra.mxu0 %vm501_vm1, %v1232_v23 }
  0x30   : > { %696 = vmatpush.bf16.msra.mxu0 %v1249_v13  ;;  %1228 = vmatmul.msk.bf16.gmra.mxu2 %vm501_vm1, %v1246_v24 }
  0x31   : > { %1195 = vmatmul.msk.bf16.gmra.mxu1 %vm501_vm1, %v1234_v25 }
  0x34   : > { %697 = vmatpush.bf16.msra.mxu0 %v1248_v16 }
  0x3f   : > { %1168 = vmatmul.msk.bf16.gmra.mxu3 %vm501_vm1, %v1241_v26  ;;  %1226 = vmatmul.msk.bf16.vlgmr.msra.gmra.mxu0 %vm501_vm1, %v1244_v27 }
  0x40   : > { %1229 = vmatmul.msk.bf16.gmra.mxu2 %vm501_vm1, %v1247_v28 }
  0x41   : > { %1196 = vmatmul.msk.bf16.gmra.mxu1 %vm501_vm1, %v1235_v29 }
  0x9c   : > { %v527_v30 = vpop.f32.mrf.mxu0 }
  0x9e   : > { %v611_v31 = vpop.f32.mrf.mxu1 }
  0xa2   : > { %v532_v32 = vpop.f32.mrf.mxu3 }
  0xa3   : > { %v612_v33 = vadd.f32 %v611_v31, %v532_v32  ;;  %v704_v34 = vpop.f32.mrf.mxu2 }
  0xa4   : > { %v529_v35 = vpop.f32.mrf.mxu0 }
  0xa5   : > { %v1523_v36 = vadd.f32 %v704_v34, %v612_v33 }
  0xa6   : > { %v613_v37 = vpop.f32.mrf.mxu1 }
  0xa7   : > { %v737_v38 = vmin.f32 %v1523_v36, 20.0  ;;  %vm729_vm3 = vcmp.gt.f32.partialorder %v1523_v36, 20.0 }
  0xa9   : > { %v747_v39 = vmul.f32 1.442695, %v737_v38 }
  0xaa   : > { %v534_v40 = vpop.f32.mrf.mxu3 }
  0xab   : > { %1323 = vpow2.f32 %v747_v39  ;;  %v614_v41 = vadd.f32 %v613_v37, %v534_v40  ;;  %v706_v42 = vpop.f32.mrf.mxu2 }
  0xac   : > { %v606_v43 = vpop.f32.mrf.mxu0 }
  0xad   : > { %v1526_v44 = vadd.f32 %v706_v42, %v614_v41  ;;  %v607_v0 = vadd.f32 %v606_v43, %v527_v30 }
  0xae   : > { %v616_v45 = vpop.f32.mrf.mxu1 }
  0xaf   : > { %v738_v46 = vmin.f32 %v1526_v44, 20.0  ;;  %vm730_vm4 = vcmp.gt.f32.partialorder %v1526_v44, 20.0 }
  0xb1   : > { %v1324_v47 = vpop.eup %1323  ;;  %v749_v48 = vmul.f32 1.442695, %v738_v46 }
  0xb2   : > { %v777_v49 = vadd.f32 1.0, %v1324_v47  ;;  %v537_v50 = vpop.f32.mrf.mxu3  ;;  %v780_v57 = vmul.f32 -0.5, %v1324_v47  ;;  %v783_v5 = vand.u32 2147483647, %v1324_v47 }
  0xb3   : > { %1325 = vpow2.f32 %v749_v48  ;;  %v617_v51 = vadd.f32 %v616_v45, %v537_v50  ;;  %v709_v52 = vpop.f32.mrf.mxu2 }
  0xb4   : > { %v608_v53 = vpop.f32.mrf.mxu0  ;;  %1327 = vlog2.f32 %v777_v49  ;;  %v781_v3 = vadd.f32 1.0, %v780_v57  ;;  %vm1544_vm2 = vcmp.lt.f32.partialorder %v783_v5, 0.0004427343 }
  0xb5   : > { %v1530_v54 = vadd.f32 %v709_v52, %v617_v51  ;;  %v609_v22 = vadd.f32 %v608_v53, %v529_v35 }
  0xb6   : > { %v618_v55 = vpop.f32.mrf.mxu1  ;;  %v782_v12 = vmul.f32 %v1324_v47, %v781_v3 }
  0xb7   : > { %v739_v56 = vmin.f32 %v1530_v54, 20.0  ;;  %vm731_vm8 = vcmp.gt.f32.partialorder %v1530_v54, 20.0 }
  0xb9   : > { %v1326_v58 = vpop.eup %1325  ;;  %v751_v59 = vmul.f32 1.442695, %v739_v56 }
  0xba   : > { %v786_v60 = vadd.f32 1.0, %v1326_v58  ;;  %v539_v61 = vpop.f32.mrf.mxu3  ;;  %v1328_v62 = vpop.eup %1327  ;;  %v789_v63 = vmul.f32 -0.5, %v1326_v58  ;;  %v792_v13 = vand.u32 2147483647, %v1326_v58 }
  0xbb   : > { %1329 = vpow2.f32 %v751_v59  ;;  %v619_v1 = vadd.f32 %v618_v55, %v539_v61  ;;  %v711_v2 = vpop.f32.mrf.mxu2  ;;  %v779_v8 = vmul.f32 0.6931472, %v1328_v62 }
  0xbc   : > { %1331 = vlog2.f32 %v786_v60  ;;  %v699_v4 = vpop.f32.mrf.mxu0  ;;  %v790_v9 = vadd.f32 1.0, %v789_v63  ;;  %vm793_vm5 = vcmp.lt.f32.partialorder %v792_v13, 0.0004427343 }
  0xbd   : > { %v1538_v6 = vadd.f32 %v711_v2, %v619_v1  ;;  %v1540_v7 = vadd.f32 %v699_v4, %v607_v0  ;;  %v785_v20 = vsel %vm1544_vm2, %v782_v12, %v779_v8 }
  0xbe   : > { %v621_v14 = vpop.f32.mrf.mxu1  ;;  %v791_v25 = vmul.f32 %v1326_v58, %v790_v9  ;;  %v1557_v32 = vsel %vm729_vm3, %v1523_v36, %v785_v20 }
  0xbf   : > { %v740_v10 = vmin.f32 %v1538_v6, 20.0  ;;  %v735_v11 = vmin.f32 %v1540_v7, 20.0  ;;  %vm732_vm9 = vcmp.gt.f32.partialorder %v1538_v6, 20.0  ;;  %vm727_vm12 = vcmp.gt.f32.partialorder %v1540_v7, 20.0 }
  0xc1   : > { %v1330_v15 = vpop.eup %1329  ;;  %v753_v17 = vmul.f32 1.442695, %v740_v10  ;;  %v743_v18 = vmul.f32 1.442695, %v735_v11 }
  0xc2   : > { %v1332_v19 = vpop.eup %1331  ;;  %v795_v21 = vadd.f32 1.0, %v1330_v15  ;;  %v542_v23 = vpop.f32.mrf.mxu3  ;;  %v798_v36 = vmul.f32 -0.5, %v1330_v15  ;;  %v801_v51 = vand.u32 2147483647, %v1330_v15 }
  0xc3   : > { %v788_v24 = vmul.f32 0.6931472, %v1332_v19  ;;  %1333 = vpow2.f32 %v753_v17  ;;  %v622_v26 = vadd.f32 %v621_v14, %v542_v23  ;;  %v714_v27 = vpop.f32.mrf.mxu2 }
  0xc4   : > { %v701_v28 = vpop.f32.mrf.mxu0  ;;  %1335 = vpow2.f32 %v743_v18  ;;  %v799_v49 = vadd.f32 1.0, %v798_v36  ;;  %vm802_vm6 = vcmp.lt.f32.partialorder %v801_v51, 0.0004427343 }
  0xc5   : > { %v794_v29 = vsel %vm793_vm5, %v791_v25, %v788_v24  ;;  %v1552_v30 = vadd.f32 %v714_v27, %v622_v26  ;;  %v1554_v31 = vadd.f32 %v701_v28, %v609_v22  ;;  %1337 = vlog2.f32 %v795_v21 }
  0xc6   : > { %v1565_v33 = vsel %vm730_vm4, %v1526_v44, %v794_v29  ;;  %v623_v42 = vpop.f32.mrf.mxu1  ;;  %v800_v59 = vmul.f32 %v1330_v15, %v799_v49 }
  0xc7   : > { %v1258_v34 = vpack.c.bf16 %v1565_v33, %v1557_v32  ;;  %v741_v35 = vmin.f32 %v1552_v30, 20.0  ;;  %v736_v37 = vmin.f32 %v1554_v31, 20.0  ;;  %vm728_vm13 = vcmp.gt.f32.partialorder %v1554_v31, 20.0 }
  0xc8   : > { %vm733_vm15 = vcmp.gt.f32.partialorder %v1552_v30, 20.0 }
  0xc9   : > { %v1334_v38 = vpop.eup %1333  ;;  %1270 = vst [vmem:[%s1562_s12 + $0x8] sm:$0xff] %v1258_v34   ;;  %v755_v39 = vmul.f32 1.442695, %v741_v35  ;;  %v745_v41 = vmul.f32 1.442695, %v736_v37 }
  0xca   : > { %v804_v40 = vadd.f32 1.0, %v1334_v38  ;;  %v544_v43 = vpop.f32.mrf.mxu3  ;;  %v1336_v45 = vpop.eup %1335  ;;  %v807_v46 = vmul.f32 -0.5, %v1334_v38  ;;  %v810_v56 = vand.u32 2147483647, %v1334_v38 }
  0xcb   : > { %1339 = vpow2.f32 %v755_v39  ;;  %v624_v44 = vadd.f32 %v623_v42, %v544_v43  ;;  %v1338_v47 = vpop.eup %1337  ;;  %v759_v48 = vadd.f32 1.0, %v1336_v45  ;;  %v716_v50 = vpop.f32.mrf.mxu2  ;;  %v762_v1 = vmul.f32 -0.5, %v1336_v45 }
  0xcc   : > { %1341 = vlog2.f32 %v804_v40  ;;  %v797_v53 = vmul.f32 0.6931472, %v1338_v47  ;;  %v808_v55 = vadd.f32 1.0, %v807_v46  ;;  %vm811_vm7 = vcmp.lt.f32.partialorder %v810_v56, 0.0004427343 }
  0xcd   : > { %1343 = vpow2.f32 %v745_v41  ;;  %v1572_v52 = vadd.f32 %v716_v50, %v624_v44  ;;  %v763_v13 = vadd.f32 1.0, %v762_v1  ;;  %v765_v14 = vand.u32 2147483647, %v1336_v45 }
  0xce   : > { %1345 = vlog2.f32 %v759_v48  ;;  %v803_v62 = vsel %vm802_vm6, %v800_v59, %v797_v53  ;;  %v809_v0 = vmul.f32 %v1334_v38, %v808_v55 }
  0xcf   : > { %v742_v57 = vmin.f32 %v1572_v52, 20.0  ;;  %v1578_v9 = vsel %vm731_vm8, %v1530_v54, %v803_v62  ;;  %v764_v18 = vmul.f32 %v1336_v45, %v763_v13  ;;  %vm766_vm10 = vcmp.lt.f32.partialorder %v765_v14, 0.0004427343 }
  0xd0   : > { %vm734_vm1 = vcmp.gt.f32.partialorder %v1572_v52, 20.0 }
  0xd1   : > { %v1340_v58 = vpop.eup %1339  ;;  %v757_v3 = vmul.f32 1.442695, %v742_v57 }
  0xd2   : > { %v1342_v60 = vpop.eup %1341  ;;  %v813_v11 = vadd.f32 1.0, %v1340_v58  ;;  %v816_v20 = vmul.f32 -0.5, %v1340_v58  ;;  %v819_v37 = vand.u32 2147483647, %v1340_v58 }
  0xd3   : > { %v1344_v61 = vpop.eup %1343  ;;  %v806_v63 = vmul.f32 0.6931472, %v1342_v60 }
  0xd4   : > { %v768_v2 = vadd.f32 1.0, %v1344_v61  ;;  %v771_v5 = vmul.f32 -0.5, %v1344_v61  ;;  %v1346_v8 = vpop.eup %1345  ;;  %v774_v17 = vand.u32 2147483647, %v1344_v61  ;;  %v817_v29 = vadd.f32 1.0, %v816_v20 }
  0xd5   : > { %v812_v4 = vsel %vm811_vm7, %v809_v0, %v806_v63  ;;  %v761_v15 = vmul.f32 0.6931472, %v1346_v8  ;;  %vm820_vm14 = vcmp.lt.f32.partialorder %v819_v37, 0.0004427343 }
  0xd6   : > { %v1581_v10 = vsel %vm732_vm9, %v1538_v6, %v812_v4  ;;  %1347 = vlog2.f32 %v768_v2  ;;  %v772_v16 = vadd.f32 1.0, %v771_v5  ;;  %vm775_vm11 = vcmp.lt.f32.partialorder %v774_v17, 0.0004427343 }
  0xd7   : > { %v1263_v12 = vpack.c.bf16 %v1581_v10, %v1578_v9  ;;  %1349 = vpow2.f32 %v757_v3  ;;  %v767_v54 = vsel %vm766_vm10, %v764_v18, %v761_v15  ;;  %v818_v40 = vmul.f32 %v1340_v58, %v817_v29 }
  0xd8   : > { %1351 = vlog2.f32 %v813_v11  ;;  %v773_v21 = vmul.f32 %v1344_v61, %v772_v16  ;;  %v831_v26 = vsel %vm727_vm12, %v1540_v7, %v767_v54 }
  0xd9   : > { %1271 = vst [vmem:[%s1562_s12 + $0x10] sm:$0xff] %v1263_v12  }
  0xdc   : > { %v1348_v19 = vpop.eup %1347 }
  0xdd   : > { %v770_v6 = vmul.f32 0.6931472, %v1348_v19  ;;  %v1350_v22 = vpop.eup %1349 }
  0xde   : > { %v822_v24 = vadd.f32 1.0, %v1350_v22  ;;  %v1352_v25 = vpop.eup %1351  ;;  %v825_v28 = vmul.f32 -0.5, %v1350_v22  ;;  %v828_v42 = vand.u32 2147483647, %v1350_v22 }
  0xdf   : > { %v776_v23 = vsel %vm775_vm11, %v773_v21, %v770_v6  ;;  %v815_v38 = vmul.f32 0.6931472, %v1352_v25 }
  0xe0   : > { %v832_v27 = vsel %vm728_vm13, %v1554_v31, %v776_v23  ;;  %1353 = vlog2.f32 %v822_v24  ;;  %v826_v39 = vadd.f32 1.0, %v825_v28  ;;  %vm829_vm0 = vcmp.lt.f32.partialorder %v828_v42, 0.0004427343 }
  0xe1   : > { %v1253_v34 = vpack.c.bf16 %v832_v27, %v831_v26  ;;  %v855_v35 = vadd.f32 %v832_v27, %v831_v26  ;;  %v821_v31 = vsel %vm820_vm14, %v818_v40, %v815_v38 }
  0xe2   : > { %v827_v46 = vmul.f32 %v1350_v22, %v826_v39  ;;  %v837_v47 = vsel %vm733_vm15, %v1552_v30, %v821_v31 }
  0xe3   : > { %1254 = vst [vmem:[%s1562_s12] sm:$0xff] %v1253_v34   ;;  %v856_v36 = vadd.f32 %v855_v35, %v1557_v32 }
  0xe5   : > { %v857_v41 = vadd.f32 %v856_v36, %v1565_v33 }
  0xe6   : > { %v1354_v7 = vpop.eup %1353 }
  0xe7   : > { %v858_v43 = vadd.f32 %v857_v41, %v1578_v9  ;;  %v824_v45 = vmul.f32 0.6931472, %v1354_v7 }
  0xe9   : > { %v859_v44 = vadd.f32 %v858_v43, %v1581_v10  ;;  %v830_v48 = vsel %vm829_vm0, %v827_v46, %v824_v45 }
  0xea   : > { %v838_v49 = vsel %vm734_vm1, %v1572_v52, %v830_v48 }
  0xeb   : > { %v860_v50 = vadd.f32 %v859_v44, %v837_v47  ;;  %v1268_v51 = vpack.c.bf16 %v838_v49, %v837_v47 }
  0xed   : > { %v861_v53 = vadd.f32 %v860_v50, %v838_v49  ;;  %1272 = vst [vmem:[%s1562_s12 + $0x18] sm:$0xff] %v1268_v51  }
  0xef   : > { %v862_v55 = vrot.slane %v861_v53, 4 }
  0xf1   : > { %v863_v56 = vadd.f32 %v862_v55, %v861_v53 }
  0xf3   : > { %v864_v57 = vrot.slane %v863_v56, 2 }
  0xf5   : > { %v865_v58 = vadd.f32 %v864_v57, %v863_v56 }
  0xf7   : > { %v866_v59 = vrot.slane %v865_v58, 1 }
  0xf9   : > { %v867_v30 = vadd.f32 %v866_v59, %v865_v58 }
  0xfb   : > { %v868_v52 = vmul.f32 0.015625, %v867_v30  ;;  %877 = vst [vmem:[%s1605_s25] sm:$0x1] %v867_v30 }
  0xfd   : > { %v869_v60 = vsub.f32 %v831_v26, %v868_v52  ;;  %v870_v61 = vsub.f32 %v832_v27, %v868_v52  ;;  %v871_v62 = vsub.f32 %v1557_v32, %v868_v52  ;;  %v872_v63 = vsub.f32 %v1565_v33, %v868_v52 }
  0xfe   : > { %v873_v2 = vsub.f32 %v1578_v9, %v868_v52  ;;  %v874_v5 = vsub.f32 %v1581_v10, %v868_v52  ;;  %v875_v12 = vsub.f32 %v837_v47, %v868_v52  ;;  %v876_v15 = vsub.f32 %v838_v49, %v868_v52 }
  0xff   : > { %v878_v0 = vmul.f32 %v869_v60, %v869_v60  ;;  %v879_v1 = vmul.f32 %v870_v61, %v870_v61  ;;  %v880_v3 = vmul.f32 %v871_v62, %v871_v62  ;;  %v881_v8 = vmul.f32 %v872_v63, %v872_v63 }
 0x100   : > { %v882_v13 = vmul.f32 %v873_v2, %v873_v2  ;;  %v883_v16 = vmul.f32 %v874_v5, %v874_v5  ;;  %v884_v32 = vmul.f32 %v875_v12, %v875_v12  ;;  %v885_v33 = vmul.f32 %v876_v15, %v876_v15 }
 0x101   : > { %v886_v4 = vadd.f32 %v879_v1, %v878_v0 }
 0x103   : > { %v887_v11 = vadd.f32 %v886_v4, %v880_v3 }
 0x105   : > { %v888_v14 = vadd.f32 %v887_v11, %v881_v8 }
 0x107   : > { %v889_v17 = vadd.f32 %v888_v14, %v882_v13 }
 0x109   : > { %v890_v18 = vadd.f32 %v889_v17, %v883_v16 }
 0x10b   : > { %v891_v19 = vadd.f32 %v890_v18, %v884_v32 }
 0x10d   : > { %v892_v54 = vadd.f32 %v891_v19, %v885_v33 }
 0x10f   : > { %v893_v20 = vrot.slane %v892_v54, 4 }
 0x111   : > { %v894_v9 = vadd.f32 %v893_v20, %v892_v54 }
 0x113   : > { %v895_v6 = vrot.slane %v894_v9, 2 }
 0x115   : > { %v896_v21 = vadd.f32 %v895_v6, %v894_v9 }
 0x117   : > { %v897_v22 = vrot.slane %v896_v21, 1 }
 0x119   : > { %v898_v10 = vadd.f32 %v897_v22, %v896_v21 }
 0x11b   : > { %899 = vst [vmem:[%s1605_s25 + $0x1] sm:$0x1] %v898_v10 }
 0x11c PF: > { %s16_s22 = sadd.s32 1, %s1393_s22   ;;  %s1636_s18 = smov %s1385_s20 }
 0x11d   : > { %p13_p10 = scmp.ge.s32.totalorder %s16_s22, 18   ;;  %s1637_s19 = smov %s1389_s21 }
 0x11e   : > { %s1638_s20 = smov %s1641_s23  ;;  %s1639_s21 = smov %s1645_s24 }
 0x11f   :  { %15 = sbr.rel (!%p13_p10) target bundleno = 3 (0x3), region = 86 }

</bundles_post_ra>
